<compile_context>
chip_gen: v7x
topology: tpu7x:2x2x1
jax: 0.10.0
libtpu: 0.0.40
codegen_flags: <defaults>
</compile_context>

<pallas_src>
import functools

import jax
import jax.numpy as jnp
from jax import lax
from jax.experimental import pallas as pl
from jax.experimental.pallas import tpu as pltpu


def _i32(x: int) -> jnp.int32:
    """Python int -> wrapped int32 constant (for >2^31 hash constants)."""
    x &= 0xFFFFFFFF
    if x >= 1 << 31:
        x -= 1 << 32
    return jnp.int32(x)


def _round_up(x: int, m: int) -> int:
    return (x + m - 1) // m * m


# ~1 MiB of f32 per block buffer; (4+1+4) B/elem double-buffered + hash temporaries
# stays comfortably under v5e's 16 MiB scoped VMEM default (v6e/v7x have 32 MiB).
_MAX_BLOCK_ELEMS = 256 * 1024


def _choose_tiles(B, F, sub):
    """Pick (tb, Bp, tf, Fp). `sub` = sublane quantum of the narrowest input dtype."""
    # Feature axis: full extent when small (no pad, lane-dense single block, no
    # 128-divisibility requirement); otherwise 512-lane tiles (~85% of HBM roofline).
    if F <= 2048:
        tf, Fp = F, F
    else:
        tf, Fp = 512, _round_up(F, 512)

    full_fits = B * tf <= _MAX_BLOCK_ELEMS
    cands = tuple(c for c in (512, 256, 128, 64, 32, 16, 8) if c >= sub)

    if B % sub == 0 and B > sub:
        # Tile with a divisor of B: no batch padding.  Prefer >=2 blocks along the
        # batch axis (v7x megacore) while keeping the per-block VMEM budget.
        for cand in cands:
            if B % cand == 0 and cand * tf <= _MAX_BLOCK_ELEMS and (cand <= B // 2 or not full_fits):
                return cand, B, tf, Fp
        return B, B, tf, Fp
    if full_fits:
        # Full-extent batch block: no padding needed even when B % 8 != 0.
        return B, B, tf, Fp
    # Large, unaligned batch: pad up to the sublane quantum and tile.
    Bp = _round_up(B, sub)
    for cand in cands:
        if Bp % cand == 0 and cand * tf <= _MAX_BLOCK_ELEMS:
            return cand, Bp, tf, Fp
    return sub, Bp, tf, Fp


def _make_masking_kernel(binary_select: bool):
    def masking_kernel(seed_ref, x_ref, s_ref, vals_ref, o_ref):
        # seed_ref : SMEM (1,) int32                       (scalar-prefetched)
        # x_ref    : VMEM (TB, TF) features tile           (native dtype)
        # s_ref    : VMEM (TB, TF) selection tile          (native dtype, e.g. int8)
        # vals_ref : VMEM (V,  TF) per-feature candidate mask values (float32)
        # o_ref    : VMEM (TB, TF) output tile
        tb, tf = x_ref.shape
        V = vals_ref.shape[0]
        i = pl.program_id(0)
        j = pl.program_id(1)

        x = x_ref[...].astype(jnp.float32)
        vals = vals_ref[...].astype(jnp.float32)          # hoisted once: (V, TF)

        # ---- stateless counter-based PRNG -------------------------------------
        # Rank-1 row/col contributions (seed folded into the row term); only the
        # broadcast add and the avalanche touch full (TB, TF) tiles.
        seed = seed_ref[0]
        rowc = ((lax.broadcasted_iota(jnp.int32, (tb, 1), 0) + i * jnp.int32(tb))
                * _i32(0x9E3779B1) + seed * _i32(0xC2B2AE3D))        # (TB, 1)
        colc = ((lax.broadcasted_iota(jnp.int32, (1, tf), 1) + j * jnp.int32(tf))
                * _i32(0x85EBCA77))                                   # (1, TF)
        h = rowc + colc                                               # (TB, TF)
        # Two xor-shift-mul avalanche rounds (plenty of mixing for mask sampling).
        h = lax.bitwise_xor(h, lax.shift_right_logical(h, jnp.int32(16)))
        h = h * _i32(0x7FEB352D)
        h = lax.bitwise_xor(h, lax.shift_right_logical(h, jnp.int32(15)))
        h = h * _i32(0x846CA68B)

        # Uniform index in [0, V) from the (well-mixed) top 16 bits: idx = (u*V)>>16.
        # Exact for V dividing 65536 (e.g. V=4); tiny modulo bias otherwise.
        top = lax.shift_right_logical(h, jnp.int32(16))               # in [0, 65535]
        idx = lax.shift_right_logical(top * jnp.int32(V), jnp.int32(16))

        # Gather sampled[b, f] = vals[idx[b, f], f] via a small static select chain.
        sampled = jnp.broadcast_to(vals[0][None, :], (tb, tf))
        for k in range(1, V):
            sampled = jnp.where(idx == k, vals[k][None, :], sampled)
        # TODO(synk): for large V (>~16) switch to a log2(V) binary select tree on idx bits.

        # Where the sampled value collides with the true feature value, force -1.
        sampled = jnp.where(x == sampled, jnp.float32(-1.0), sampled)

        if binary_select:
            # Selection is a {0,1} mask: single predicate select, no int->f32 widen.
            out = jnp.where(s_ref[...] != 0, x, sampled)
        else:
            # Soft (float) selection: keep the reference multiplicative blend.
            s = s_ref[...].astype(jnp.float32)
            out = x * s + (jnp.float32(1.0) - s) * sampled
        o_ref[...] = out.astype(o_ref.dtype)

    return masking_kernel


def masking_forward(features, selection, masking_values, *, seed=0, out_dtype=jnp.float32):
    """features, selection: (B, F); masking_values: (F, V).  Returns (B, F) `out_dtype`.

    Matches the PyTorch `Masking.forward` semantics (per-element uniform draw from
    that feature's candidate set, collisions forced to -1, blend by selection).
    """
    B, F = features.shape
    Fv, V = masking_values.shape
    assert Fv == F, "masking_values must have one row of candidate values per feature"

    sel = selection
    if sel.dtype == jnp.bool_:
        sel = sel.astype(jnp.int8)        # avoid packed-bool VMEM loads
    binary_select = jnp.issubdtype(sel.dtype, jnp.integer)

    min_itemsize = min(jnp.dtype(features.dtype).itemsize, jnp.dtype(sel.dtype).itemsize)
    sub = {1: 32, 2: 16}.get(min_itemsize, 8)   # sublane quantum for narrowest input

    tb, Bp, tf, Fp = _choose_tiles(B, F, sub)

    # ---- pad only when the chosen tiling actually needs it (no dtype upcast) ----
    if Bp != B or Fp != F:
        xp = jnp.pad(features, ((0, Bp - B), (0, Fp - F)))
        sp = jnp.pad(sel, ((0, Bp - B), (0, Fp - F)))
    else:
        xp, sp = features, sel
    vals_t = jnp.asarray(masking_values, jnp.float32).T               # (V, F)
    if Fp != F:
        vals_t = jnp.pad(vals_t, ((0, 0), (0, Fp - F)))               # tiny table
    seed_arr = jnp.array([seed], dtype=jnp.int32)

    out_itemsize = jnp.dtype(out_dtype).itemsize
    bytes_accessed = (xp.size * xp.dtype.itemsize
                      + sp.size * sp.dtype.itemsize
                      + vals_t.size * 4
                      + Bp * Fp * out_itemsize)
    cost = pl.CostEstimate(flops=int(Bp * Fp * (V + 10)),
                           transcendentals=0,
                           bytes_accessed=int(bytes_accessed))

    out = pl.pallas_call(
        _make_masking_kernel(bool(binary_select)),
        out_shape=jax.ShapeDtypeStruct((Bp, Fp), out_dtype),
        grid_spec=pltpu.PrefetchScalarGridSpec(
            num_scalar_prefetch=1,                       # seed lives in SMEM
            grid=(Bp // tb, Fp // tf),
            in_specs=[
                pl.BlockSpec((tb, tf), lambda i, j, seed: (i, j)),   # features
                pl.BlockSpec((tb, tf), lambda i, j, seed: (i, j)),   # selection
                pl.BlockSpec((V, tf), lambda i, j, seed: (0, j)),    # candidate values
            ],
            out_specs=pl.BlockSpec((tb, tf), lambda i, j, seed: (i, j)),
        ),
        compiler_params=pltpu.CompilerParams(
            # Stateless per-element hash -> tiles are fully independent.
            dimension_semantics=("parallel", "parallel"),
        ),
        cost_estimate=cost,
    )(seed_arr, xp, sp, vals_t)

    if Bp != B or Fp != F:
        out = out[:B, :F]
    return out


if __name__ == "__main__":
    B, F, V = 6, 96, 4   # small, non-aligned shapes -> full-extent blocks, zero padding

    key = jax.random.PRNGKey(0)
    k_feat, k_sel = jax.random.split(key)

    # Per-feature table of V distinct candidate values (deterministic).
    masking_values = (
        jnp.arange(F, dtype=jnp.float32)[:, None] * 10.0
        + jnp.arange(V, dtype=jnp.float32)[None, :]
    )                                                            # (F, V)

    # Features drawn from each feature's own candidate set (as in INVASE usage).
    feat_idx = jax.random.randint(k_feat, (B, F), 0, V)
    features = jnp.take_along_axis(
        jnp.broadcast_to(masking_values[None, :, :], (B, F, V)),
        feat_idx[:, :, None],
        axis=2,
    )[..., 0]                                                    # (B, F) float32

    # Selection vector in {0, 1}, carried as 1-byte ints (no wrapper upcast).
    selection = jax.random.bernoulli(k_sel, 0.5, (B, F)).astype(jnp.int8)

    out = masking_forward(features, selection, masking_values, seed=42)
    out = jax.block_until_ready(out)

    # Light sanity checks on semantics (not a bitwise reference — randomness differs).
    assert out.shape == (B, F) and out.dtype == jnp.float32
    # Where selection == 1 the original feature must pass through unchanged.
    sel_mask = selection == 1
    assert bool(jnp.all(jnp.where(sel_mask, out == features, True)))
    # Where selection == 0 the output must be either -1 or one of that feature's
    # candidate masking values.
    in_candidates = (out[..., None] == masking_values[None, :, :]).any(-1)
    ok_unsel = in_candidates | (out == jnp.float32(-1.0))
    assert bool(jnp.all(jnp.where(~sel_mask, ok_unsel, True)))

    print("KERNEL_OK")
</pallas_src>

<mosaic_0001>
module attributes {stable_mosaic.version = 11 : i64} {
  func.func @masking_kernel(%arg0: i32, %arg1: i32, %arg2: memref<1xi32, #tpu.memory_space<smem>>, %arg3: memref<6x96xf32, #tpu.memory_space<vmem>>, %arg4: memref<6x96xi8, #tpu.memory_space<vmem>>, %arg5: memref<4x96xf32, #tpu.memory_space<vmem>>, %arg6: memref<6x96xf32, #tpu.memory_space<vmem>>) attributes {dimension_semantics = [#tpu.dimension_semantics<parallel>, #tpu.dimension_semantics<parallel>], iteration_bounds = array<i64: 1, 1>, scalar_prefetch = 1 : i64, scratch_operands = 0 : i64, tpu.core_type = #tpu.core_type<tc>, window_params = [{transform_indices = @transform_0, window_bounds = array<i64: 6, 96>}, {transform_indices = @transform_1, window_bounds = array<i64: 6, 96>}, {transform_indices = @transform_2, window_bounds = array<i64: 4, 96>}, {transform_indices = @transform_3, window_bounds = array<i64: 6, 96>}]} {
    %c0 = arith.constant 0 : index
    %c0_0 = arith.constant 0 : index
    %0 = vector.load %arg3[%c0, %c0_0] : memref<6x96xf32, #tpu.memory_space<vmem>>, vector<6x96xf32>
    %c0_1 = arith.constant 0 : index
    %c0_2 = arith.constant 0 : index
    %1 = vector.load %arg5[%c0_1, %c0_2] : memref<4x96xf32, #tpu.memory_space<vmem>>, vector<4x96xf32>
    %c0_3 = arith.constant 0 : index
    %2 = memref.load %arg2[%c0_3] : memref<1xi32, #tpu.memory_space<smem>>
    %3 = tpu.iota {dimensions = array<i32: 0>} : vector<6x1xi32>
    %c6_i32 = arith.constant 6 : i32
    %4 = arith.muli %arg0, %c6_i32 : i32
    %5 = vector.broadcast %4 : i32 to vector<6x1xi32>
    %6 = arith.addi %3, %5 : vector<6x1xi32>
    %c-1640531535_i32 = arith.constant -1640531535 : i32
    %7 = vector.broadcast %c-1640531535_i32 : i32 to vector<6x1xi32>
    %8 = arith.muli %6, %7 : vector<6x1xi32>
    %c-1028477379_i32 = arith.constant -1028477379 : i32
    %9 = arith.muli %2, %c-1028477379_i32 : i32
    %10 = vector.broadcast %9 : i32 to vector<6x1xi32>
    %11 = arith.addi %8, %10 : vector<6x1xi32>
    %12 = tpu.iota {dimensions = array<i32: 1>} : vector<1x96xi32>
    %c96_i32 = arith.constant 96 : i32
    %13 = arith.muli %arg1, %c96_i32 : i32
    %14 = vector.broadcast %13 : i32 to vector<1x96xi32>
    %15 = arith.addi %12, %14 : vector<1x96xi32>
    %c-2048144777_i32 = arith.constant -2048144777 : i32
    %16 = vector.broadcast %c-2048144777_i32 : i32 to vector<1x96xi32>
    %17 = arith.muli %15, %16 : vector<1x96xi32>
    %18 = vector.broadcast %11 : vector<6x1xi32> to vector<6x96xi32>
    %19 = vector.broadcast %17 : vector<1x96xi32> to vector<6x96xi32>
    %20 = arith.addi %18, %19 : vector<6x96xi32>
    %c16_i32 = arith.constant 16 : i32
    %21 = vector.broadcast %c16_i32 : i32 to vector<6x96xi32>
    %22 = arith.shrui %20, %21 : vector<6x96xi32>
    %23 = arith.xori %20, %22 : vector<6x96xi32>
    %c2146121005_i32 = arith.constant 2146121005 : i32
    %24 = vector.broadcast %c2146121005_i32 : i32 to vector<6x96xi32>
    %25 = arith.muli %23, %24 : vector<6x96xi32>
    %c15_i32 = arith.constant 15 : i32
    %26 = vector.broadcast %c15_i32 : i32 to vector<6x96xi32>
    %27 = arith.shrui %25, %26 : vector<6x96xi32>
    %28 = arith.xori %25, %27 : vector<6x96xi32>
    %c-2073254261_i32 = arith.constant -2073254261 : i32
    %29 = vector.broadcast %c-2073254261_i32 : i32 to vector<6x96xi32>
    %30 = arith.muli %28, %29 : vector<6x96xi32>
    %c16_i32_4 = arith.constant 16 : i32
    %31 = vector.broadcast %c16_i32_4 : i32 to vector<6x96xi32>
    %32 = arith.shrui %30, %31 : vector<6x96xi32>
    %c4_i32 = arith.constant 4 : i32
    %33 = vector.broadcast %c4_i32 : i32 to vector<6x96xi32>
    %34 = arith.muli %32, %33 : vector<6x96xi32>
    %c16_i32_5 = arith.constant 16 : i32
    %35 = vector.broadcast %c16_i32_5 : i32 to vector<6x96xi32>
    %36 = arith.shrui %34, %35 : vector<6x96xi32>
    %37 = vector.extract_strided_slice %1 {offsets = [0, 0], sizes = [1, 96], strides = [1, 1]} : vector<4x96xf32> to vector<1x96xf32>
    %38 = vector.shape_cast %37 : vector<1x96xf32> to vector<96xf32>
    %39 = vector.shape_cast %38 : vector<96xf32> to vector<1x96xf32>
    %40 = vector.shape_cast %39 : vector<1x96xf32> to vector<1x96xf32>
    %41 = vector.broadcast %40 : vector<1x96xf32> to vector<6x96xf32>
    %c1_i32 = arith.constant 1 : i32
    %42 = vector.broadcast %c1_i32 : i32 to vector<6x96xi32>
    %43 = arith.cmpi eq, %36, %42 : vector<6x96xi32>
    %44 = vector.extract_strided_slice %1 {offsets = [1, 0], sizes = [1, 96], strides = [1, 1]} : vector<4x96xf32> to vector<1x96xf32>
    %45 = vector.shape_cast %44 : vector<1x96xf32> to vector<96xf32>
    %46 = vector.shape_cast %45 : vector<96xf32> to vector<1x96xf32>
    %47 = vector.shape_cast %46 : vector<1x96xf32> to vector<1x96xf32>
    %48 = vector.broadcast %47 : vector<1x96xf32> to vector<6x96xf32>
    %49 = arith.select %43, %48, %41 : vector<6x96xi1>, vector<6x96xf32>
    %c2_i32 = arith.constant 2 : i32
    %50 = vector.broadcast %c2_i32 : i32 to vector<6x96xi32>
    %51 = arith.cmpi eq, %36, %50 : vector<6x96xi32>
    %52 = vector.extract_strided_slice %1 {offsets = [2, 0], sizes = [1, 96], strides = [1, 1]} : vector<4x96xf32> to vector<1x96xf32>
    %53 = vector.shape_cast %52 : vector<1x96xf32> to vector<96xf32>
    %54 = vector.shape_cast %53 : vector<96xf32> to vector<1x96xf32>
    %55 = vector.shape_cast %54 : vector<1x96xf32> to vector<1x96xf32>
    %56 = vector.broadcast %55 : vector<1x96xf32> to vector<6x96xf32>
    %57 = arith.select %51, %56, %49 : vector<6x96xi1>, vector<6x96xf32>
    %c3_i32 = arith.constant 3 : i32
    %58 = vector.broadcast %c3_i32 : i32 to vector<6x96xi32>
    %59 = arith.cmpi eq, %36, %58 : vector<6x96xi32>
    %60 = vector.extract_strided_slice %1 {offsets = [3, 0], sizes = [1, 96], strides = [1, 1]} : vector<4x96xf32> to vector<1x96xf32>
    %61 = vector.shape_cast %60 : vector<1x96xf32> to vector<96xf32>
    %62 = vector.shape_cast %61 : vector<96xf32> to vector<1x96xf32>
    %63 = vector.shape_cast %62 : vector<1x96xf32> to vector<1x96xf32>
    %64 = vector.broadcast %63 : vector<1x96xf32> to vector<6x96xf32>
    %65 = arith.select %59, %64, %57 : vector<6x96xi1>, vector<6x96xf32>
    %66 = arith.cmpf oeq, %0, %65 : vector<6x96xf32>
    %cst = arith.constant -1.000000e+00 : f32
    %67 = vector.broadcast %cst : f32 to vector<6x96xf32>
    %68 = arith.select %66, %67, %65 : vector<6x96xi1>, vector<6x96xf32>
    %c0_6 = arith.constant 0 : index
    %c0_7 = arith.constant 0 : index
    %69 = vector.load %arg4[%c0_6, %c0_7] : memref<6x96xi8, #tpu.memory_space<vmem>>, vector<6x96xi8>
    %c0_i8 = arith.constant 0 : i8
    %70 = vector.broadcast %c0_i8 : i8 to vector<6x96xi8>
    %71 = arith.cmpi ne, %69, %70 : vector<6x96xi8>
    %72 = arith.select %71, %0, %68 : vector<6x96xi1>, vector<6x96xf32>
    %c0_8 = arith.constant 0 : index
    %c0_9 = arith.constant 0 : index
    %73 = vector.load %arg6[%c0_8, %c0_9] : memref<6x96xf32, #tpu.memory_space<vmem>>, vector<6x96xf32>
    tpu.vector_store %arg6[%c0_8, %c0_9], %72 {strides = array<i32>} : memref<6x96xf32, #tpu.memory_space<vmem>>, vector<6x96xf32>,
    return
  }
  func.func @transform_0(%arg0: i32, %arg1: i32, %arg2: memref<1xi32, #tpu.memory_space<smem>>) -> (i32, i32) {
    %c0_i32 = arith.constant 0 : i32
    return %arg0, %arg1 : i32, i32
  }
  func.func @transform_1(%arg0: i32, %arg1: i32, %arg2: memref<1xi32, #tpu.memory_space<smem>>) -> (i32, i32) {
    %c0_i32 = arith.constant 0 : i32
    return %arg0, %arg1 : i32, i32
  }
  func.func @transform_2(%arg0: i32, %arg1: i32, %arg2: memref<1xi32, #tpu.memory_space<smem>>) -> (i32, i32) {
    %c0_i32 = arith.constant 0 : i32
    %c0_i32_0 = arith.constant 0 : i32
    return %c0_i32, %arg1 : i32, i32
  }
  func.func @transform_3(%arg0: i32, %arg1: i32, %arg2: memref<1xi32, #tpu.memory_space<smem>>) -> (i32, i32) {
    %c0_i32 = arith.constant 0 : i32
    return %arg0, %arg1 : i32, i32
  }
}

</mosaic_0001>

<bundles_post_ra>
// kernel: tpu_custom_call.1
= control target key start
LH: loop header
LB: loop body
LE: loop exit
PB: predicated region body
PF: predicated region fallthrough
CT: control target
= control target key end

     0   :  { %10 = vsyncpa [#allocation5], 0  ;;  %s218_s0 = inlined_call_operand.<no memory space> [shape: s32[1], index: 0, kind: input, shape index: {}]   ;;  %s219_s1 = inlined_call_operand.hbm [shape: f32[6,96], index: 1, kind: input, shape index: {}]   ;;  %s220_s2 = inlined_call_operand.vmem [shape: s8[6,96], index: 2, kind: input, shape index: {}]   ;;  %s221_s3 = inlined_call_operand.vmem [shape: f32[4,96], index: 3, kind: input, shape index: {}]   ;;  %s222_s4 = inlined_call_operand.hbm [shape: f32[6,96], index: 4, kind: output, shape index: {}]  }
   0x1   :  { %11 = vsyncpa [#allocation6], 0  ;;  %s157_s15 = smov [#allocation4]   ;;  %s109_s19 = scalar_lea.hbm %s219_s1, 128 }
   0x2   :  { %s18_s16 = sshll.u32 %s157_s15, 4  ;;  %p110_p0 = scmp.ne.s32.totalorder %s219_s1, %s109_s19  ;;  %s19_s16 = int_to_ptr.vmem [resolvable:$true] %s18_s16 }
   0x3   :  { %p113_p1 = scmp.lt.u32.totalorder %s109_s19, %s219_s1 }
   0x5   :  { %p115_p2 = pnand %p113_p1, %p110_p0 }
   0x7   :  { %118 = shalt.err (!%p115_p2)
}
   0x8   :  { %s119_s24 = scalar_lea.vmem %s19_s16, 128  ;;  %p124_p4 = scmp.lt.s32.totalorder %s19_s16, %s19_s16 }
   0x9   :  { %p120_p3 = scmp.ne.s32.totalorder %s19_s16, %s119_s24  ;;  %p125_p5 = scmp.lt.s32.totalorder %s119_s24, %s119_s24 }
   0xb   :  { %p126_p6 = por %p125_p5, %p124_p4 }
   0xd   :  { %p127_p7 = pnand %p126_p6, %p120_p3 }
   0xf   :  { %130 = shalt.err (!%p127_p7)
}
  0x10   :  { %21 = dma.hbm_to_vmem [thread:$0]  %s219_s1, 128, %s19_s16, [#allocation5]  }
  0x11   :  { %153 = dma.done.wait [#allocation5], 128  }
  0x12   :  { %154 = vsyncadd [#allocation5], 4294967168  ;;  %v34_v0 = vlaneseq  ;;  %s40_s29 = smul.u32 3266489917, %s218_s0  ;;  %v83_v13 = vld [vmem:[%s220_s2] sm:$0x3] }
  0x13   :  { %vm84_vm0 = vnez %v83_v13  ;;  %v32_v17 = vld [vmem:[%s221_s3] sm:$0xf]  ;;  %v158_v22 = vmov 0   ;;  %s159_s2 = smov [#allocation7]   ;;  %vm89_vm6 = vcmask 783360  }
  0x14   :  { %v35_v1 = vshrl.u32 %v34_v0, 7  ;;  %v44_v2 = vand.u32 127, %v34_v0  ;;  %v41_v3 = vstv %s40_s29  ;;  %v85_v23 = vsel %vm84_vm0, 16843009, %v158_v22  ;;  %v31_v30 = vld [vmem:[#allocation4] sm:$0x3f] }
  0x15   :  { %v86_v29 = vunpack.c.0.s8 %v85_v23  ;;  %s97_s3 = sshll.u32 %s159_s2, 4  ;;  %s98_s3 = int_to_ptr.vmem [resolvable:$true] %s97_s3 }
  0x16   :  { %v39_v4 = vmul.u32 2654435761, %v35_v1  ;;  %v48_v5 = vmul.u32 2246822519, %v44_v2  ;;  %v61_v15 = vsub.s32 0, %v35_v1  ;;  %v66_v16 = vsub.s32 1, %v35_v1  ;;  %p136_p9 = scmp.lt.s32.totalorder %s98_s3, %s98_s3 }
  0x17   :  { %v72_v19 = vsub.s32 2, %v35_v1  ;;  %v78_v20 = vsub.s32 3, %v35_v1  ;;  %vm87_vm4 = vcmp.ne.s32.totalorder %v86_v29, 0  ;;  %s131_s6 = scalar_lea.vmem %s98_s3, 128 }
  0x18   :  { %v42_v6 = vadd.s32 %v41_v3, %v39_v4  ;;  %v62_v24 = vrot.slane %v32_v17, %v61_v15  ;;  %v67_v25 = vrot.slane %v32_v17, %v66_v16  ;;  %p132_p8 = scmp.ne.s32.totalorder %s98_s3, %s131_s6  ;;  %p137_p10 = scmp.lt.s32.totalorder %s131_s6, %s131_s6 }
  0x19   :  { %v73_v27 = vrot.slane %v32_v17, %v72_v19  ;;  %v79_v28 = vrot.slane %v32_v17, %v78_v20 }
  0x1a   :  { %v49_v7 = vadd.s32 %v48_v5, %v42_v6  ;;  %p138_p11 = por %p137_p10, %p136_p9 }
  0x1c   :  { %v50_v8 = vshrl.u32 %v49_v7, 16  ;;  %p139_p12 = pnand %p138_p11, %p132_p8 }
  0x1e   :  { %v51_v9 = vxor.u32 %v50_v8, %v49_v7 }
  0x20   :  { %v52_v10 = vmul.u32 2146121005, %v51_v9 }
  0x22   :  { %v53_v11 = vshrl.u32 %v52_v10, 15 }
  0x24   :  { %v54_v12 = vxor.u32 %v53_v11, %v52_v10 }
  0x26   :  { %v55_v14 = vmul.u32 2221713035, %v54_v12 }
  0x28   :  { %v56_v18 = vshrl.u32 %v55_v14, 16 }
  0x2a   :  { %v57_v21 = vmul.u32 4, %v56_v18 }
  0x2c   :  { %v58_v26 = vshrl.u32 %v57_v21, 16 }
  0x2e   :  { %vm63_vm1 = vcmp.eq.s32.totalorder %v58_v26, 1  ;;  %vm69_vm2 = vcmp.eq.s32.totalorder %v58_v26, 2  ;;  %vm75_vm3 = vcmp.eq.s32.totalorder %v58_v26, 3 }
  0x2f   :  { %v68_v31 = vsel %vm63_vm1, %v67_v25, %v62_v24 }
  0x30   :  { %v74_v32 = vsel %vm69_vm2, %v73_v27, %v68_v31 }
  0x31   :  { %v80_v33 = vsel %vm75_vm3, %v79_v28, %v74_v32 }
  0x32   :  { %vm81_vm5 = vcmp.eq.f32.partialorder %v31_v30, %v80_v33 }
  0x33   :  { %v82_v34 = vsel %vm81_vm5, -1.0, %v80_v33 }
  0x34   :  { %v88_v35 = vsel %vm87_vm4, %v31_v30, %v82_v34 }
  0x35   :  { %90 = vst.msk [vmem:[#allocation7] sm:$0x3f] %vm89_vm6, %v88_v35 }
  0x36   :  { %142 = shalt.err (!%p139_p12)
}
  0x37   :  { %s143_s9 = scalar_lea.hbm %s222_s4, 128 }
  0x38   :  { %p144_p13 = scmp.ne.s32.totalorder %s222_s4, %s143_s9  ;;  %p147_p0 = scmp.lt.u32.totalorder %s143_s9, %s222_s4 }
  0x3a   :  { %p149_p1 = pnand %p147_p0, %p144_p13 }
  0x3c   :  { %152 = shalt.err (!%p149_p1)
}
  0x3d   :  { %100 = dma.vmem_to_hbm [thread:$0]  %s98_s3, 128, %s222_s4, [#allocation6]  }
  0x3e   :  { %155 = dma.done.wait [#allocation6], 128  }
  0x3f   :  { %156 = vsyncadd [#allocation6], 4294967168 }
  0x40   :  { %104 = vsyncpa [#allocation5], 1 }
  0x41   :  { %105 = vsyncpa [#allocation6], 1 }

</bundles_post_ra>
